<compile_context>
chip_gen: v7x
topology: tpu7x:2x2x1
jax: 0.10.0
libtpu: 0.0.40
codegen_flags: <defaults>
</compile_context>

<pallas_src>
import math

import jax
import jax.numpy as jnp
import numpy as np
from jax.experimental import pallas as pl
from jax.experimental.pallas import tpu as pltpu


# ----------------------------------------------------------------------------
# Host-side (NumPy) constant construction: nearest-neighbour inverse-warp
# selection matrix. Depends only on (transformation, aux, H, W).
# ----------------------------------------------------------------------------
def build_warp_matrix_np(transformation: str, aux: float, H: int, W: int) -> np.ndarray:
    """Returns M [H*W, H*W] with out_flat = M @ in_flat (zero rows = zero fill).

    NOTE: np.rint is half-to-even and the center is (dim-1)/2; torchvision's
    tensor-path affine can differ by one pixel at exact .5 sampling boundaries.
    """
    # TODO(synk): torchvision defaults to nearest for TF.affine/rotate on tensors;
    # a bilinear variant would need a 4-tap weighted matrix instead of one-hot.
    if transformation == "scale":
        # TF.affine(scale=1/aux): inverse map output->input is src = aux*out
        t00, t01, t10, t11 = float(aux), 0.0, 0.0, float(aux)
    elif transformation == "rotation":
        # TF.rotate(X, -degrees(aux)): inverse map is rotation by +aux radians
        c, s = math.cos(float(aux)), math.sin(float(aux))
        t00, t01, t10, t11 = c, s, -s, c
    else:
        raise ValueError(f"Unknown transformation {transformation}")

    ys = np.arange(H, dtype=np.float32) - (H - 1) / 2.0
    xs = np.arange(W, dtype=np.float32) - (W - 1) / 2.0
    xg, yg = np.meshgrid(xs, ys)                      # [H, W], x = width axis
    x_src = t00 * xg + t01 * yg + (W - 1) / 2.0
    y_src = t10 * xg + t11 * yg + (H - 1) / 2.0
    xi = np.rint(x_src).astype(np.int32)              # nearest (half-to-even)
    yi = np.rint(y_src).astype(np.int32)
    valid = (xi >= 0) & (xi < W) & (yi >= 0) & (yi < H)
    src = np.clip(yi, 0, H - 1) * W + np.clip(xi, 0, W - 1)   # [H, W]
    M = np.zeros((H * W, H * W), dtype=np.float32)
    rows = np.arange(H * W)
    M[rows, src.reshape(-1)] = valid.reshape(-1).astype(np.float32)
    return M                                           # [HW, HW]


# ----------------------------------------------------------------------------
# Pallas kernel: per-pixel linear -> inverse warp -> ReLU -> mean pool (folded
# into head weights) -> head. One gridless invocation, all batches fused via
# block-diagonal weights.
# ----------------------------------------------------------------------------
def _inverse_model_kernel(x_ref, m_ref, w1_ref, b1_ref, w2_ref, b2_ref, out_ref):
    # x:   [HW, B*C]        input planes, pixel-major (features on lanes)
    # m:   [HW, HW]   f32   one-hot inverse-warp selection matrix
    # w1:  [B*C, B*HID]     block-diag of W1 (per-pixel linear, batch-fused)
    # b1:  [1, B*HID]       row bias (broadcast over pixels/sublanes)
    # w2:  [B*HID, B*CLS]   block-diag of (W2 / HW)  -- mean-pool scale folded in
    # b2:  [1, B*CLS]
    # out: [1, B*CLS]       logits row, single lane-oriented store
    #
    # Per-pixel linear commutes with the pixel-selection warp, so do the tiny
    # K=B*C matmul first and give the dominant warp matmul full M=HW rows.
    z = jnp.dot(x_ref[...], w1_ref[...], preferred_element_type=jnp.float32)   # [HW, B*HID]
    z = jnp.dot(m_ref[...], z, preferred_element_type=jnp.float32)             # warped [HW, B*HID]
    h = jnp.maximum(z + b1_ref[...], 0.0)                                      # ReLU
    pooled = jnp.sum(h, axis=0, keepdims=True)                                 # [1, B*HID] (XLU reduce)
    out_ref[...] = (
        jnp.dot(pooled, w2_ref[...], preferred_element_type=jnp.float32) + b2_ref[...]
    )


@jax.jit
def _jitted_forward(X, M, w1_big, b1_row, w2_big, b2_row):
    B, C, H, W = X.shape
    HW = H * W
    BCLS = b2_row.shape[1]
    CLS = BCLS // B

    # Pixel-major layout: x_in[p, b*C + c] = X[b, c, p]  (tiny transpose, inside jit).
    x_in = X.reshape(B * C, HW).T.astype(jnp.float32)                          # [HW, B*C]

    out_row = pl.pallas_call(
        _inverse_model_kernel,
        out_shape=jax.ShapeDtypeStruct((1, BCLS), jnp.float32),
        in_specs=[pl.BlockSpec(memory_space=pltpu.MemorySpace.VMEM)] * 6,
        out_specs=pl.BlockSpec(memory_space=pltpu.MemorySpace.VMEM),
    )(x_in, M, w1_big, b1_row, w2_big, b2_row)

    return out_row.reshape(B, CLS)


# ----------------------------------------------------------------------------
# Module-style wrapper mirroring InverseWrapper(model, transformation).
# Constants (warp matrix + batch-fused weights) are cached across calls.
# ----------------------------------------------------------------------------
class InverseWrapperPallas:
    def __init__(self, params, transformation):
        W1, b1, W2, b2 = params
        self.transformation = transformation
        self.W1 = np.asarray(W1, dtype=np.float32)            # [C, HID]
        self.b1 = np.asarray(b1, dtype=np.float32).reshape(-1)  # [HID]
        self.W2 = np.asarray(W2, dtype=np.float32)            # [HID, CLS]
        self.b2 = np.asarray(b2, dtype=np.float32).reshape(-1)  # [CLS]
        self._cache = {}

    def _constants(self, aux, B, C, H, W):
        key = (float(aux), B, C, H, W)
        if key not in self._cache:
            HID = self.W1.shape[1]
            CLS = self.W2.shape[1]
            HW = H * W
            # TODO(synk): for HW beyond ~2K (large images, esp. on v7x's 64 MiB VMEM)
            # replace the dense [HW,HW] one-hot matrix with a scalar-prefetched
            # src-index/valid-mask gather path.
            M = build_warp_matrix_np(self.transformation, aux, H, W)           # [HW, HW] f32
            eye_b = np.eye(B, dtype=np.float32)
            w1_big = np.kron(eye_b, self.W1)                                   # [B*C, B*HID]
            b1_row = np.tile(self.b1.reshape(1, HID), (1, B))                  # [1, B*HID]
            w2_big = np.kron(eye_b, self.W2 / float(HW))                       # [B*HID, B*CLS]
            b2_row = np.tile(self.b2.reshape(1, CLS), (1, B))                  # [1, B*CLS]
            self._cache[key] = tuple(
                jnp.asarray(a) for a in (M, w1_big, b1_row, w2_big, b2_row)
            )
        return self._cache[key]

    def __call__(self, X, aux):
        B, C, H, W = X.shape
        M, w1_big, b1_row, w2_big, b2_row = self._constants(aux, B, C, H, W)
        return _jitted_forward(X, M, w1_big, b1_row, w2_big, b2_row)


# ----------------------------------------------------------------------------
# Pure-JAX reference for validation (same nearest-neighbour warp semantics).
# ----------------------------------------------------------------------------
def _reference(X, aux, transformation, params):
    W1, b1, W2, b2 = params
    B, C, H, Wd = X.shape
    M = jnp.asarray(build_warp_matrix_np(transformation, float(aux), H, Wd))
    x_flat = jnp.transpose(X, (0, 2, 3, 1)).reshape(B, H * Wd, C)
    warped = jnp.einsum("pq,bqc->bpc", M, x_flat)
    h = jnp.maximum(jnp.einsum("bpc,ch->bph", warped, W1) + b1, 0.0)
    pooled = jnp.mean(h, axis=1)
    return pooled @ W2 + b2


if __name__ == "__main__":
    B, C, H, W = 2, 4, 16, 16
    HID, CLS = 32, 8

    key = jax.random.PRNGKey(0)
    kx, k1, k2, k3, k4 = jax.random.split(key, 5)
    X = jax.random.normal(kx, (B, C, H, W), dtype=jnp.float32)
    params = (
        0.1 * jax.random.normal(k1, (C, HID), dtype=jnp.float32),
        0.01 * jax.random.normal(k2, (1, HID), dtype=jnp.float32),
        0.1 * jax.random.normal(k3, (HID, CLS), dtype=jnp.float32),
        0.01 * jax.random.normal(k4, (1, CLS), dtype=jnp.float32),
    )

    ok = True
    for transformation, aux in (("rotation", 0.6), ("scale", 1.25)):
        wrapper = InverseWrapperPallas(params, transformation)
        pred = wrapper(X, aux)
        jax.block_until_ready(pred)
        # second call exercises the cached-constant / jit-cached fast path
        pred = wrapper(X, aux)
        jax.block_until_ready(pred)
        ref = _reference(X, aux, transformation, params)
        if not np.allclose(np.asarray(pred), np.asarray(ref), atol=1e-4, rtol=1e-4):
            ok = False
            print(f"MISMATCH for {transformation}")

    if ok:
        print("KERNEL_OK")
</pallas_src>

<mosaic_0001>
module attributes {stable_mosaic.version = 11 : i64} {
  func.func @_inverse_model_kernel(%arg0: memref<256x8xf32, #tpu.memory_space<vmem>>, %arg1: memref<256x256xf32, #tpu.memory_space<vmem>>, %arg2: memref<8x64xf32, #tpu.memory_space<vmem>>, %arg3: memref<1x64xf32, #tpu.memory_space<vmem>>, %arg4: memref<64x16xf32, #tpu.memory_space<vmem>>, %arg5: memref<1x16xf32, #tpu.memory_space<vmem>>, %arg6: memref<1x16xf32, #tpu.memory_space<vmem>>) attributes {dimension_semantics = [], scalar_prefetch = 0 : i64, scratch_operands = 0 : i64, tpu.core_type = #tpu.core_type<tc>} {
    %c0 = arith.constant 0 : index
    %c0_0 = arith.constant 0 : index
    %0 = vector.load %arg0[%c0, %c0_0] : memref<256x8xf32, #tpu.memory_space<vmem>>, vector<256x8xf32>
    %c0_1 = arith.constant 0 : index
    %c0_2 = arith.constant 0 : index
    %1 = vector.load %arg2[%c0_1, %c0_2] : memref<8x64xf32, #tpu.memory_space<vmem>>, vector<8x64xf32>
    %cst = arith.constant dense<0.000000e+00> : vector<256x64xf32>
    %2 = tpu.matmul %0, %1, %cst {dimension_numbers = #tpu.dot_dimension_numbers<[1], [0], [0], [1], [0, 0, 1, 1], [], []>} : vector<256x8xf32>, vector<8x64xf32>, vector<256x64xf32> -> vector<256x64xf32>
    %c0_3 = arith.constant 0 : index
    %c0_4 = arith.constant 0 : index
    %3 = vector.load %arg1[%c0_3, %c0_4] : memref<256x256xf32, #tpu.memory_space<vmem>>, vector<256x256xf32>
    %cst_5 = arith.constant dense<0.000000e+00> : vector<256x64xf32>
    %4 = tpu.matmul %3, %2, %cst_5 {dimension_numbers = #tpu.dot_dimension_numbers<[1], [0], [0], [1], [0, 0, 1, 1], [], []>} : vector<256x256xf32>, vector<256x64xf32>, vector<256x64xf32> -> vector<256x64xf32>
    %c0_6 = arith.constant 0 : index
    %c0_7 = arith.constant 0 : index
    %5 = vector.load %arg3[%c0_6, %c0_7] : memref<1x64xf32, #tpu.memory_space<vmem>>, vector<1x64xf32>
    %6 = vector.broadcast %5 : vector<1x64xf32> to vector<256x64xf32>
    %7 = arith.addf %4, %6 : vector<256x64xf32>
    %cst_8 = arith.constant 0.000000e+00 : f32
    %8 = vector.broadcast %cst_8 : f32 to vector<256x64xf32>
    %9 = arith.maximumf %7, %8 : vector<256x64xf32>
    %cst_9 = arith.constant dense<0.000000e+00> : vector<64xf32>
    %10 = vector.multi_reduction <add>, %9, %cst_9 [0] : vector<256x64xf32> to vector<64xf32>
    %11 = vector.shape_cast %10 : vector<64xf32> to vector<1x64xf32>
    %c0_10 = arith.constant 0 : index
    %c0_11 = arith.constant 0 : index
    %12 = vector.load %arg4[%c0_10, %c0_11] : memref<64x16xf32, #tpu.memory_space<vmem>>, vector<64x16xf32>
    %cst_12 = arith.constant dense<0.000000e+00> : vector<1x16xf32>
    %13 = tpu.matmul %11, %12, %cst_12 {dimension_numbers = #tpu.dot_dimension_numbers<[1], [0], [0], [1], [0, 0, 1, 1], [], []>} : vector<1x64xf32>, vector<64x16xf32>, vector<1x16xf32> -> vector<1x16xf32>
    %c0_13 = arith.constant 0 : index
    %c0_14 = arith.constant 0 : index
    %14 = vector.load %arg5[%c0_13, %c0_14] : memref<1x16xf32, #tpu.memory_space<vmem>>, vector<1x16xf32>
    %15 = arith.addf %13, %14 : vector<1x16xf32>
    %c0_15 = arith.constant 0 : index
    %c0_16 = arith.constant 0 : index
    %16 = vector.load %arg6[%c0_15, %c0_16] : memref<1x16xf32, #tpu.memory_space<vmem>>, vector<1x16xf32>
    tpu.vector_store %arg6[%c0_15, %c0_16], %15 {strides = array<i32>} : memref<1x16xf32, #tpu.memory_space<vmem>>, vector<1x16xf32>,
    return
  }
}

</mosaic_0001>

<bundles_post_ra>
// kernel: _jitted_forward.1
= control target key start
LH: loop header
LB: loop body
LE: loop exit
PB: predicated region body
PF: predicated region fallthrough
CT: control target
= control target key end

     0   :  { %11 = vsyncpa [#allocation3], 0  ;;  %s1146_s21 = smov [#allocation2]   ;;  %s1508_s0 = inlined_call_operand.vmem [shape: f32[256,8], index: 0, kind: input, shape index: {}]   ;;  %s1509_s1 = inlined_call_operand.hbm [shape: f32[256,256], index: 1, kind: input, shape index: {}]   ;;  %s1510_s2 = inlined_call_operand.vmem [shape: f32[8,64], index: 2, kind: input, shape index: {}]   ;;  %s1511_s3 = inlined_call_operand.vmem [shape: f32[1,64], index: 3, kind: input, shape index: {}]   ;;  %s1512_s4 = inlined_call_operand.vmem [shape: f32[64,16], index: 4, kind: input, shape index: {}]   ;;  %s1513_s5 = inlined_call_operand.vmem [shape: f32[1,16], index: 5, kind: input, shape index: {}]   ;;  %s1514_s6 = inlined_call_operand.vmem [shape: f32[1,16], index: 6, kind: output, shape index: {}]  }
   0x1   :  { %s19_s22 = sshll.u32 %s1146_s21, 4  ;;  %s1122_s25 = scalar_lea.hbm %s1509_s1, 8192  ;;  %s20_s22 = int_to_ptr.vmem [resolvable:$true] %s19_s22 }
   0x2   :  { %p1123_p0 = scmp.ne.s32.totalorder %s1509_s1, %s1122_s25  ;;  %p1126_p1 = scmp.lt.u32.totalorder %s1122_s25, %s1509_s1 }
   0x4   :  { %p1128_p2 = pnand %p1126_p1, %p1123_p0 }
   0x6   :  { %1131 = shalt.err (!%p1128_p2)
}
   0x7   :  { %s1132_s30 = scalar_lea.vmem %s20_s22, 8192  ;;  %p1137_p4 = scmp.lt.s32.totalorder %s20_s22, %s20_s22 }
   0x8   :  { %p1133_p3 = scmp.ne.s32.totalorder %s20_s22, %s1132_s30  ;;  %p1138_p5 = scmp.lt.s32.totalorder %s1132_s30, %s1132_s30 }
   0xa   :  { %p1139_p6 = por %p1138_p5, %p1137_p4 }
   0xc   :  { %p1140_p7 = pnand %p1139_p6, %p1133_p3 }
   0xe   :  { %1143 = shalt.err (!%p1140_p7)
}
   0xf   :  { %s1147_s7 = smov 256   ;;  %s1148_s8 = smov 16  }
  0x10   :  { %25 = dma.hbm_to_vmem [thread:$0]  %s1509_s1, 8192, %s20_s22, [#allocation3], %s1147_s7, %s1147_s7, %s1148_s8  }
  0x11   :  { %1144 = dma.done.wait [#allocation3], 8192  }
  0x12   :  { %1145 = vsyncadd [#allocation3], 4294959104  ;;  %vm70_vm0 = vcmask 64512   ;;  %v69_v0 = vld [vmem:[%s1510_s2] sm:$0xff]  ;;  %v38_v2 = vld [vmem:[%s1508_s0 + $0x8] sm:$0xff]  ;;  %v1149_v33 = vmov 0.0|0.0  }
  0x13   :  { %v37_v1 = vld [vmem:[%s1508_s0] sm:$0xff]  ;;  %955 = vmatprep.subr.mxu0 %v69_v0  ;;  %v39_v3 = vld [vmem:[%s1508_s0 + $0x10] sm:$0xff]  ;;  %v40_v4 = vld [vmem:[%s1508_s0 + $0x18] sm:$0xff]  ;;  %1084 = vmatprep.subr.bf16.mxu1 %v1149_v33  ;;  %vm1150_vm1 = vmmov 0   ;;  %vm720_vm2 = vcmask 523264   ;;  %vm872_vm3 = vcmask 122880  }
  0x14   :  { %957 = vmatprep.mubr.msk.f32.mxu0 %vm70_vm0, %v37_v1  ;;  %956 = vmatpush3.msra.mxu0 %v69_v0  ;;  %v41_v5 = vld [vmem:[%s1508_s0 + $0x20] sm:$0xff]  ;;  %v42_v6 = vld [vmem:[%s1508_s0 + $0x28] sm:$0xff]  ;;  %v43_v7 = vld [vmem:[%s1508_s0 + $0x30] sm:$0xff] }
  0x15   :  { %958 = vmatmul.mubr.msk.f32.vlgmr.msra.gmra.mrb[0].mxu0 %vm70_vm0, %v38_v2  ;;  %v44_v8 = vld [vmem:[%s1508_s0 + $0x38] sm:$0xff]  ;;  %v45_v9 = vld [vmem:[%s1508_s0 + $0x40] sm:$0xff]  ;;  %v46_v10 = vld [vmem:[%s1508_s0 + $0x48] sm:$0xff]  ;;  %1024 = vmatprep.subr.bf16.mxu0 %v1149_v33 }
  0x16   :  { %960 = vmatprep.mubr.msk.f32.mxu0 %vm70_vm0, %v39_v3  ;;  %v47_v11 = vld [vmem:[%s1508_s0 + $0x50] sm:$0xff]  ;;  %v48_v12 = vld [vmem:[%s1508_s0 + $0x58] sm:$0xff]  ;;  %v49_v13 = vld [vmem:[%s1508_s0 + $0x60] sm:$0xff] }
  0x17   :  { %v50_v14 = vld [vmem:[%s1508_s0 + $0x68] sm:$0xff]  ;;  %v51_v15 = vld [vmem:[%s1508_s0 + $0x70] sm:$0xff]  ;;  %v52_v16 = vld [vmem:[%s1508_s0 + $0x78] sm:$0xff] }
  0x18   :  { %v53_v17 = vld [vmem:[%s1508_s0 + $0x80] sm:$0xff]  ;;  %v54_v18 = vld [vmem:[%s1508_s0 + $0x88] sm:$0xff]  ;;  %v55_v19 = vld [vmem:[%s1508_s0 + $0x90] sm:$0xff] }
  0x19   :  { %961 = vmatmul.mubr.msk.f32.gmra.mrb[2].mxu0 %vm70_vm0, %v40_v4  ;;  %v56_v20 = vld [vmem:[%s1508_s0 + $0x98] sm:$0xff]  ;;  %v57_v21 = vld [vmem:[%s1508_s0 + $0xa0] sm:$0xff]  ;;  %v58_v22 = vld [vmem:[%s1508_s0 + $0xa8] sm:$0xff] }
  0x1a   :  { %963 = vmatprep.mubr.msk.f32.mxu0 %vm70_vm0, %v41_v5  ;;  %v59_v23 = vld [vmem:[%s1508_s0 + $0xb0] sm:$0xff]  ;;  %v60_v24 = vld [vmem:[%s1508_s0 + $0xb8] sm:$0xff]  ;;  %v61_v25 = vld [vmem:[%s1508_s0 + $0xc0] sm:$0xff] }
  0x1b   :  { %v62_v26 = vld [vmem:[%s1508_s0 + $0xc8] sm:$0xff]  ;;  %v63_v27 = vld [vmem:[%s1508_s0 + $0xd0] sm:$0xff]  ;;  %v64_v28 = vld [vmem:[%s1508_s0 + $0xd8] sm:$0xff] }
  0x1c   :  { %v65_v29 = vld [vmem:[%s1508_s0 + $0xe0] sm:$0xff]  ;;  %v66_v30 = vld [vmem:[%s1508_s0 + $0xe8] sm:$0xff]  ;;  %v67_v31 = vld [vmem:[%s1508_s0 + $0xf0] sm:$0xff] }
  0x1d   :  { %964 = vmatmul.mubr.msk.f32.gmra.mrb[4].mxu0 %vm70_vm0, %v42_v6  ;;  %v68_v32 = vld [vmem:[%s1508_s0 + $0xf8] sm:$0xff]  ;;  %v393_v34 = vld [vmem:[#allocation2 + $0x8] sm:$0xff] }
  0x1e   :  { %966 = vmatprep.mubr.msk.f32.mxu0 %vm70_vm0, %v43_v7  ;;  %v423_v35 = vld [vmem:[#allocation2 + $0xf8] sm:$0xff] }
  0x1f   :  { %602 = vmatprep.mubr.f32.mxu1 %v423_v35  ;;  %v401_v35 = vld [vmem:[#allocation2 + $0x48] sm:$0xff] }
  0x21   :  { %967 = vmatmul.mubr.msk.f32.gmra.mrb[6].mxu0 %vm70_vm0, %v44_v8 }
  0x22   :  { %969 = vmatprep.mubr.msk.f32.mxu0 %vm70_vm0, %v45_v9 }
  0x25   :  { %970 = vmatmul.mubr.msk.f32.gmra.mrb[8].mxu0 %vm70_vm0, %v46_v10 }
  0x26   :  { %972 = vmatprep.mubr.msk.f32.mxu0 %vm70_vm0, %v47_v11 }
  0x29   :  { %973 = vmatmul.mubr.msk.f32.gmra.mrb[10].mxu0 %vm70_vm0, %v48_v12 }
  0x2a   :  { %975 = vmatprep.mubr.msk.f32.mxu0 %vm70_vm0, %v49_v13 }
  0x2d   :  { %976 = vmatmul.mubr.msk.f32.gmra.mrb[12].mxu0 %vm70_vm0, %v50_v14 }
  0x2e   :  { %978 = vmatprep.mubr.msk.f32.mxu0 %vm70_vm0, %v51_v15 }
  0x31   :  { %979 = vmatmul.mubr.msk.f32.gmra.mrb[14].mxu0 %vm70_vm0, %v52_v16 }
  0x32   :  { %981 = vmatprep.mubr.msk.f32.mxu0 %vm70_vm0, %v53_v17 }
  0x35   :  { %982 = vmatmul.mubr.msk.f32.gmra.mrb[16].mxu0 %vm70_vm0, %v54_v18 }
  0x36   :  { %984 = vmatprep.mubr.msk.f32.mxu0 %vm70_vm0, %v55_v19 }
  0x39   :  { %985 = vmatmul.mubr.msk.f32.gmra.mrb[18].mxu0 %vm70_vm0, %v56_v20  ;;  %v392_v20 = vld [vmem:[#allocation2] sm:$0xff] }
  0x3a   :  { %987 = vmatprep.mubr.msk.f32.mxu0 %vm70_vm0, %v57_v21  ;;  %v422_v21 = vld [vmem:[#allocation2 + $0xf0] sm:$0xff] }
  0x3d   :  { %988 = vmatmul.mubr.msk.f32.gmra.mrb[20].mxu0 %vm70_vm0, %v58_v22  ;;  %v395_v22 = vld [vmem:[#allocation2 + $0x18] sm:$0xff] }
  0x3e   :  { %990 = vmatprep.mubr.msk.f32.mxu0 %vm70_vm0, %v59_v23  ;;  %v425_v23 = vld [vmem:[#allocation2 + $0x108] sm:$0xff] }
  0x41   :  { %991 = vmatmul.mubr.msk.f32.gmra.mrb[22].mxu0 %vm70_vm0, %v60_v24  ;;  %v394_v24 = vld [vmem:[#allocation2 + $0x10] sm:$0xff] }
  0x42   :  { %993 = vmatprep.mubr.msk.f32.mxu0 %vm70_vm0, %v61_v25  ;;  %v424_v25 = vld [vmem:[#allocation2 + $0x100] sm:$0xff] }
  0x45   :  { %994 = vmatmul.mubr.msk.f32.gmra.mrb[24].mxu0 %vm70_vm0, %v62_v26  ;;  %v397_v26 = vld [vmem:[#allocation2 + $0x28] sm:$0xff] }
  0x46   :  { %996 = vmatprep.mubr.msk.f32.mxu0 %vm70_vm0, %v63_v27  ;;  %v427_v27 = vld [vmem:[#allocation2 + $0x118] sm:$0xff] }
  0x49   :  { %997 = vmatmul.mubr.msk.f32.gmra.mrb[26].mxu0 %vm70_vm0, %v64_v28  ;;  %v396_v28 = vld [vmem:[#allocation2 + $0x20] sm:$0xff] }
  0x4a   :  { %999 = vmatprep.mubr.msk.f32.mxu0 %vm70_vm0, %v65_v29  ;;  %v426_v29 = vld [vmem:[#allocation2 + $0x110] sm:$0xff] }
  0x4d   :  { %1000 = vmatmul.mubr.msk.f32.gmra.mrb[28].mxu0 %vm70_vm0, %v66_v30  ;;  %v399_v30 = vld [vmem:[#allocation2 + $0x38] sm:$0xff] }
  0x4e   :  { %1002 = vmatprep.mubr.msk.f32.mxu0 %vm70_vm0, %v67_v31  ;;  %v429_v31 = vld [vmem:[#allocation2 + $0x128] sm:$0xff] }
  0x51   :  { %1003 = vmatmul.mubr.msk.f32.gmra.mrb[30].mxu0 %vm70_vm0, %v68_v32  ;;  %v398_v32 = vld [vmem:[#allocation2 + $0x30] sm:$0xff] }
  0x52   :  { %527 = vmatprep.mubr.f32.mxu0 %v393_v34  ;;  %v428_v34 = vld [vmem:[#allocation2 + $0x120] sm:$0xff] }
  0xe8   :  { %v959_v36 = vpop.f32.mrb[0].mxu0 }
  0xe9   :  { %v233_v37 = vpop.f32.mrb[1].mxu0 }
  0xea   :  { %v1025_v38 = vpack.c.bf16 %v959_v36, %v233_v37  ;;  %v431_v36 = vld [vmem:[#allocation2 + $0x138] sm:$0xff]  ;;  %v400_v37 = vld [vmem:[#allocation2 + $0x40] sm:$0xff] }
  0xec   :  { %v962_v39 = vpop.f32.mrb[2].mxu0  ;;  %1026 = vmatpush1.bf16.msra.mxu0 %v1025_v38  ;;  %1100 = vmatpush1.bf16.msra.mxu1 %v1025_v38  ;;  %v430_v38 = vld [vmem:[#allocation2 + $0x130] sm:$0xff] }
  0xed   :  { %v243_v40 = vpop.f32.mrb[3].mxu0  ;;  %1027 = vmatprep.subr.bf16.mxu0 %v1149_v33  ;;  %1085 = vmatprep.subr.bf16.mxu1 %v1149_v33 }
  0xee   :  { %v1028_v41 = vpack.c.bf16 %v962_v39, %v243_v40  ;;  %v403_v39 = vld [vmem:[#allocation2 + $0x58] sm:$0xff]  ;;  %v433_v40 = vld [vmem:[#allocation2 + $0x148] sm:$0xff] }
  0xf0   :  { %v965_v42 = vpop.f32.mrb[4].mxu0  ;;  %1029 = vmatpush1.bf16.msra.mxu0 %v1028_v41  ;;  %1101 = vmatpush1.bf16.msra.mxu1 %v1028_v41  ;;  %v402_v41 = vld [vmem:[#allocation2 + $0x50] sm:$0xff] }
  0xf1   :  { %v253_v43 = vpop.f32.mrb[5].mxu0  ;;  %1030 = vmatprep.subr.bf16.mxu0 %v1149_v33  ;;  %1086 = vmatprep.subr.bf16.mxu1 %v1149_v33 }
  0xf2   :  { %v1031_v44 = vpack.c.bf16 %v965_v42, %v253_v43  ;;  %v432_v42 = vld [vmem:[#allocation2 + $0x140] sm:$0xff]  ;;  %v405_v43 = vld [vmem:[#allocation2 + $0x68] sm:$0xff] }
  0xf4   :  { %v968_v45 = vpop.f32.mrb[6].mxu0  ;;  %1032 = vmatpush1.bf16.msra.mxu0 %v1031_v44  ;;  %1102 = vmatpush1.bf16.msra.mxu1 %v1031_v44  ;;  %v435_v44 = vld [vmem:[#allocation2 + $0x158] sm:$0xff] }
  0xf5   :  { %v263_v46 = vpop.f32.mrb[7].mxu0  ;;  %1033 = vmatprep.subr.bf16.mxu0 %v1149_v33  ;;  %1087 = vmatprep.subr.bf16.mxu1 %v1149_v33 }
  0xf6   :  { %v1034_v47 = vpack.c.bf16 %v968_v45, %v263_v46  ;;  %v404_v45 = vld [vmem:[#allocation2 + $0x60] sm:$0xff]  ;;  %v434_v46 = vld [vmem:[#allocation2 + $0x150] sm:$0xff] }
  0xf8   :  { %v971_v48 = vpop.f32.mrb[8].mxu0  ;;  %1035 = vmatpush1.bf16.msra.mxu0 %v1034_v47  ;;  %1103 = vmatpush1.bf16.msra.mxu1 %v1034_v47  ;;  %v407_v47 = vld [vmem:[#allocation2 + $0x78] sm:$0xff] }
  0xf9   :  { %v273_v49 = vpop.f32.mrb[9].mxu0  ;;  %1036 = vmatprep.subr.bf16.mxu0 %v1149_v33  ;;  %1088 = vmatprep.subr.bf16.mxu1 %v1149_v33 }
  0xfa   :  { %v1037_v50 = vpack.c.bf16 %v971_v48, %v273_v49  ;;  %v437_v48 = vld [vmem:[#allocation2 + $0x168] sm:$0xff]  ;;  %v406_v49 = vld [vmem:[#allocation2 + $0x70] sm:$0xff] }
  0xfc   :  { %v974_v51 = vpop.f32.mrb[10].mxu0  ;;  %1038 = vmatpush1.bf16.msra.mxu0 %v1037_v50  ;;  %1104 = vmatpush1.bf16.msra.mxu1 %v1037_v50  ;;  %v436_v50 = vld [vmem:[#allocation2 + $0x160] sm:$0xff] }
  0xfd   :  { %v283_v52 = vpop.f32.mrb[11].mxu0  ;;  %1039 = vmatprep.subr.bf16.mxu0 %v1149_v33  ;;  %1089 = vmatprep.subr.bf16.mxu1 %v1149_v33 }
  0xfe   :  { %v1040_v53 = vpack.c.bf16 %v974_v51, %v283_v52  ;;  %v409_v51 = vld [vmem:[#allocation2 + $0x88] sm:$0xff]  ;;  %v439_v52 = vld [vmem:[#allocation2 + $0x178] sm:$0xff] }
 0x100   :  { %v977_v54 = vpop.f32.mrb[12].mxu0  ;;  %1041 = vmatpush1.bf16.msra.mxu0 %v1040_v53  ;;  %1105 = vmatpush1.bf16.msra.mxu1 %v1040_v53  ;;  %v408_v53 = vld [vmem:[#allocation2 + $0x80] sm:$0xff] }
 0x101   :  { %v293_v55 = vpop.f32.mrb[13].mxu0  ;;  %1042 = vmatprep.subr.bf16.mxu0 %v1149_v33  ;;  %1090 = vmatprep.subr.bf16.mxu1 %v1149_v33 }
 0x102   :  { %v1043_v56 = vpack.c.bf16 %v977_v54, %v293_v55  ;;  %v438_v54 = vld [vmem:[#allocation2 + $0x170] sm:$0xff]  ;;  %v411_v55 = vld [vmem:[#allocation2 + $0x98] sm:$0xff] }
 0x104   :  { %v980_v57 = vpop.f32.mrb[14].mxu0  ;;  %1044 = vmatpush1.bf16.msra.mxu0 %v1043_v56  ;;  %1106 = vmatpush1.bf16.msra.mxu1 %v1043_v56  ;;  %v441_v56 = vld [vmem:[#allocation2 + $0x188] sm:$0xff] }
 0x105   :  { %v303_v58 = vpop.f32.mrb[15].mxu0  ;;  %1045 = vmatprep.subr.bf16.mxu0 %v1149_v33  ;;  %1091 = vmatprep.subr.bf16.mxu1 %v1149_v33 }
 0x106   :  { %v1046_v59 = vpack.c.bf16 %v980_v57, %v303_v58  ;;  %v410_v57 = vld [vmem:[#allocation2 + $0x90] sm:$0xff]  ;;  %v440_v58 = vld [vmem:[#allocation2 + $0x180] sm:$0xff] }
 0x108   :  { %v983_v60 = vpop.f32.mrb[16].mxu0  ;;  %1047 = vmatpush1.bf16.msra.mxu0 %v1046_v59  ;;  %1107 = vmatpush1.bf16.msra.mxu1 %v1046_v59  ;;  %v413_v59 = vld [vmem:[#allocation2 + $0xa8] sm:$0xff] }
 0x109   :  { %v313_v61 = vpop.f32.mrb[17].mxu0  ;;  %1048 = vmatprep.subr.bf16.mxu0 %v1149_v33  ;;  %1092 = vmatprep.subr.bf16.mxu1 %v1149_v33 }
 0x10a   :  { %v1049_v62 = vpack.c.bf16 %v983_v60, %v313_v61  ;;  %v443_v60 = vld [vmem:[#allocation2 + $0x198] sm:$0xff]  ;;  %v412_v61 = vld [vmem:[#allocation2 + $0xa0] sm:$0xff] }
 0x10c   :  { %v986_v63 = vpop.f32.mrb[18].mxu0  ;;  %1050 = vmatpush1.bf16.msra.mxu0 %v1049_v62  ;;  %1108 = vmatpush1.bf16.msra.mxu1 %v1049_v62  ;;  %v442_v62 = vld [vmem:[#allocation2 + $0x190] sm:$0xff] }
 0x10d   :  { %v323_v0 = vpop.f32.mrb[19].mxu0  ;;  %1051 = vmatprep.subr.bf16.mxu0 %v1149_v33  ;;  %1093 = vmatprep.subr.bf16.mxu1 %v1149_v33 }
 0x10e   :  { %v1052_v1 = vpack.c.bf16 %v986_v63, %v323_v0  ;;  %v415_v63 = vld [vmem:[#allocation2 + $0xb8] sm:$0xff]  ;;  %v445_v0 = vld [vmem:[#allocation2 + $0x1a8] sm:$0xff] }
 0x110   :  { %v989_v2 = vpop.f32.mrb[20].mxu0  ;;  %1053 = vmatpush1.bf16.msra.mxu0 %v1052_v1  ;;  %1109 = vmatpush1.bf16.msra.mxu1 %v1052_v1  ;;  %v414_v1 = vld [vmem:[#allocation2 + $0xb0] sm:$0xff] }
 0x111   :  { %v333_v3 = vpop.f32.mrb[21].mxu0  ;;  %1054 = vmatprep.subr.bf16.mxu0 %v1149_v33  ;;  %1094 = vmatprep.subr.bf16.mxu1 %v1149_v33 }
 0x112   :  { %v1055_v4 = vpack.c.bf16 %v989_v2, %v333_v3  ;;  %v444_v2 = vld [vmem:[#allocation2 + $0x1a0] sm:$0xff]  ;;  %v417_v3 = vld [vmem:[#allocation2 + $0xc8] sm:$0xff] }
 0x114   :  { %v992_v5 = vpop.f32.mrb[22].mxu0  ;;  %1056 = vmatpush1.bf16.msra.mxu0 %v1055_v4  ;;  %1110 = vmatpush1.bf16.msra.mxu1 %v1055_v4  ;;  %v447_v4 = vld [vmem:[#allocation2 + $0x1b8] sm:$0xff] }
 0x115   :  { %v343_v6 = vpop.f32.mrb[23].mxu0  ;;  %1057 = vmatprep.subr.bf16.mxu0 %v1149_v33  ;;  %1095 = vmatprep.subr.bf16.mxu1 %v1149_v33 }
 0x116   :  { %v1058_v7 = vpack.c.bf16 %v992_v5, %v343_v6  ;;  %v416_v5 = vld [vmem:[#allocation2 + $0xc0] sm:$0xff]  ;;  %v446_v6 = vld [vmem:[#allocation2 + $0x1b0] sm:$0xff] }
 0x118   :  { %v995_v8 = vpop.f32.mrb[24].mxu0  ;;  %1059 = vmatpush1.bf16.msra.mxu0 %v1058_v7  ;;  %1111 = vmatpush1.bf16.msra.mxu1 %v1058_v7  ;;  %v419_v7 = vld [vmem:[#allocation2 + $0xd8] sm:$0xff] }
 0x119   :  { %v353_v9 = vpop.f32.mrb[25].mxu0  ;;  %1060 = vmatprep.subr.bf16.mxu0 %v1149_v33  ;;  %1096 = vmatprep.subr.bf16.mxu1 %v1149_v33 }
 0x11a   :  { %v1061_v10 = vpack.c.bf16 %v995_v8, %v353_v9  ;;  %v449_v8 = vld [vmem:[#allocation2 + $0x1c8] sm:$0xff]  ;;  %v418_v9 = vld [vmem:[#allocation2 + $0xd0] sm:$0xff] }
 0x11c   :  { %v998_v11 = vpop.f32.mrb[26].mxu0  ;;  %1062 = vmatpush1.bf16.msra.mxu0 %v1061_v10  ;;  %1112 = vmatpush1.bf16.msra.mxu1 %v1061_v10  ;;  %v448_v10 = vld [vmem:[#allocation2 + $0x1c0] sm:$0xff] }
 0x11d   :  { %v363_v12 = vpop.f32.mrb[27].mxu0  ;;  %1063 = vmatprep.subr.bf16.mxu0 %v1149_v33  ;;  %1097 = vmatprep.subr.bf16.mxu1 %v1149_v33 }
 0x11e   :  { %v1064_v13 = vpack.c.bf16 %v998_v11, %v363_v12  ;;  %v421_v11 = vld [vmem:[#allocation2 + $0xe8] sm:$0xff]  ;;  %v451_v12 = vld [vmem:[#allocation2 + $0x1d8] sm:$0xff] }
 0x120   :  { %v1001_v14 = vpop.f32.mrb[28].mxu0  ;;  %1065 = vmatpush1.bf16.msra.mxu0 %v1064_v13  ;;  %1113 = vmatpush1.bf16.msra.mxu1 %v1064_v13  ;;  %v420_v13 = vld [vmem:[#allocation2 + $0xe0] sm:$0xff] }
 0x121   :  { %v373_v15 = vpop.f32.mrb[29].mxu0  ;;  %1066 = vmatprep.subr.bf16.mxu0 %v1149_v33  ;;  %1098 = vmatprep.subr.bf16.mxu1 %v1149_v33 }
 0x122   :  { %v1067_v16 = vpack.c.bf16 %v1001_v14, %v373_v15  ;;  %v450_v14 = vld [vmem:[#allocation2 + $0x1d0] sm:$0xff]  ;;  %v453_v15 = vld [vmem:[#allocation2 + $0x1e8] sm:$0xff] }
 0x124   :  { %v1004_v17 = vpop.f32.mrb[30].mxu0  ;;  %1068 = vmatpush1.bf16.msra.mxu0 %v1067_v16  ;;  %1114 = vmatpush1.bf16.msra.mxu1 %v1067_v16  ;;  %v452_v16 = vld [vmem:[#allocation2 + $0x1e0] sm:$0xff] }
 0x125   :  { %v383_v18 = vpop.f32.mrb[31].mxu0  ;;  %1069 = vmatprep.subr.bf16.mxu0 %v1149_v33  ;;  %1099 = vmatprep.subr.bf16.mxu1 %v1149_v33 }
 0x126   :  { %v1070_v19 = vpack.c.bf16 %v1004_v17, %v383_v18  ;;  %v455_v17 = vld [vmem:[#allocation2 + $0x1f8] sm:$0xff]  ;;  %v454_v18 = vld [vmem:[#allocation2 + $0x1f0] sm:$0xff] }
 0x128   :  { %1071 = vmatpush1.bf16.msra.mxu0 %v1070_v19  ;;  %1115 = vmatpush1.bf16.msra.mxu1 %v1070_v19  ;;  %v790_v19 = vld [vmem:[%s1512_s4] sm:$0xff] }
 0x129   :  { %1072 = vmatprep.subr.bf16.mxu0 %v1149_v33 }
 0x12b   :  { %528 = vmatmul.mubr.f32.vlgmr.msra.gmra.mrb[32].mxu0 %v392_v20  ;;  %603 = vmatmul.mubr.f32.vlgmr.msra.gmra.mrb[0].mxu1 %v422_v21  ;;  %v791_v20 = vld [vmem:[%s1512_s4 + $0x8] sm:$0xff] }
 0x12c   :  { %532 = vmatprep.mubr.f32.mxu0 %v395_v22  ;;  %607 = vmatprep.mubr.f32.mxu1 %v425_v23  ;;  %v1073_v21 = vpack.c.bf16 %v791_v20, %v790_v19  ;;  %v792_v22 = vld [vmem:[%s1512_s4 + $0x10] sm:$0xff]  ;;  %v793_v23 = vld [vmem:[%s1512_s4 + $0x18] sm:$0xff] }
 0x12e   :  { %1074 = vmatpush3.bf16.msra.mxu0 %v1073_v21 }
 0x12f   :  { %533 = vmatmul.mubr.f32.gmra.mrb[34].mxu0 %v394_v24  ;;  %608 = vmatmul.mubr.f32.gmra.mrb[2].mxu1 %v424_v25  ;;  %v1076_v24 = vpack.c.bf16 %v793_v23, %v792_v22  ;;  %v794_v25 = vld [vmem:[%s1512_s4 + $0x20] sm:$0xff] }
 0x130   :  { %537 = vmatprep.mubr.f32.mxu0 %v397_v26  ;;  %612 = vmatprep.mubr.f32.mxu1 %v427_v27  ;;  %v795_v26 = vld [vmem:[%s1512_s4 + $0x28] sm:$0xff] }
 0x131   :  { %1075 = vmatprep.subr.bf16.mxu0 %v1149_v33  ;;  %v1079_v27 = vpack.c.bf16 %v795_v26, %v794_v25 }
 0x132   :  { %1077 = vmatpush3.bf16.msra.mxu0 %v1076_v24 }
 0x133   :  { %538 = vmatmul.mubr.f32.gmra.mrb[36].mxu0 %v396_v28  ;;  %613 = vmatmul.mubr.f32.gmra.mrb[4].mxu1 %v426_v29  ;;  %v796_v28 = vld [vmem:[%s1512_s4 + $0x30] sm:$0xff]  ;;  %v797_v29 = vld [vmem:[%s1512_s4 + $0x38] sm:$0xff] }
 0x134   :  { %542 = vmatprep.mubr.f32.mxu0 %v399_v30  ;;  %617 = vmatprep.mubr.f32.mxu1 %v429_v31  ;;  %v1082_v30 = vpack.c.bf16 %v797_v29, %v796_v28  ;;  %v1151_v31 = vmov 0.0  }
 0x135   :  { %1078 = vmatprep.subr.bf16.mxu0 %v1149_v33 }
 0x136   :  { %1080 = vmatpush3.bf16.msra.mxu0 %v1079_v27 }
 0x137   :  { %543 = vmatmul.mubr.f32.gmra.mrb[38].mxu0 %v398_v32  ;;  %618 = vmatmul.mubr.f32.gmra.mrb[6].mxu1 %v428_v34  ;;  %v1393_v32 = vld [vmem:[%s1511_s3] ss:$0 sm:$0xff] }
 0x138   :  { %547 = vmatprep.mubr.f32.mxu0 %v401_v35  ;;  %622 = vmatprep.mubr.f32.mxu1 %v431_v36 }
 0x139   :  { %1081 = vmatprep.subr.bf16.mxu0 %v1149_v33 }
 0x13a   :  { %1083 = vmatpush3.bf16.msra.mxu0 %v1082_v30 }
 0x13b   :  { %548 = vmatmul.mubr.f32.gmra.mrb[40].mxu0 %v400_v37  ;;  %623 = vmatmul.mubr.f32.gmra.mrb[8].mxu1 %v430_v38 }
 0x13c   :  { %552 = vmatprep.mubr.f32.mxu0 %v403_v39  ;;  %627 = vmatprep.mubr.f32.mxu1 %v433_v40 }
 0x13f   :  { %553 = vmatmul.mubr.f32.gmra.mrb[42].mxu0 %v402_v41  ;;  %628 = vmatmul.mubr.f32.gmra.mrb[10].mxu1 %v432_v42 }
 0x140   :  { %557 = vmatprep.mubr.f32.mxu0 %v405_v43  ;;  %632 = vmatprep.mubr.f32.mxu1 %v435_v44 }
 0x143   :  { %558 = vmatmul.mubr.f32.gmra.mrb[44].mxu0 %v404_v45  ;;  %633 = vmatmul.mubr.f32.gmra.mrb[12].mxu1 %v434_v46 }
 0x144   :  { %562 = vmatprep.mubr.f32.mxu0 %v407_v47  ;;  %637 = vmatprep.mubr.f32.mxu1 %v437_v48 }
 0x147   :  { %563 = vmatmul.mubr.f32.gmra.mrb[46].mxu0 %v406_v49  ;;  %638 = vmatmul.mubr.f32.gmra.mrb[14].mxu1 %v436_v50 }
 0x148   :  { %567 = vmatprep.mubr.f32.mxu0 %v409_v51  ;;  %642 = vmatprep.mubr.f32.mxu1 %v439_v52 }
 0x14b   :  { %568 = vmatmul.mubr.f32.gmra.mrb[48].mxu0 %v408_v53  ;;  %643 = vmatmul.mubr.f32.gmra.mrb[16].mxu1 %v438_v54 }
 0x14c   :  { %572 = vmatprep.mubr.f32.mxu0 %v411_v55  ;;  %647 = vmatprep.mubr.f32.mxu1 %v441_v56 }
 0x14f   :  { %573 = vmatmul.mubr.f32.gmra.mrb[50].mxu0 %v410_v57  ;;  %648 = vmatmul.mubr.f32.gmra.mrb[18].mxu1 %v440_v58 }
 0x150   :  { %577 = vmatprep.mubr.f32.mxu0 %v413_v59  ;;  %652 = vmatprep.mubr.f32.mxu1 %v443_v60 }
 0x153   :  { %578 = vmatmul.mubr.f32.gmra.mrb[52].mxu0 %v412_v61  ;;  %653 = vmatmul.mubr.f32.gmra.mrb[20].mxu1 %v442_v62 }
 0x154   :  { %582 = vmatprep.mubr.f32.mxu0 %v415_v63  ;;  %657 = vmatprep.mubr.f32.mxu1 %v445_v0 }
 0x157   :  { %583 = vmatmul.mubr.f32.gmra.mrb[54].mxu0 %v414_v1  ;;  %658 = vmatmul.mubr.f32.gmra.mrb[22].mxu1 %v444_v2 }
 0x158   :  { %587 = vmatprep.mubr.f32.mxu0 %v417_v3  ;;  %662 = vmatprep.mubr.f32.mxu1 %v447_v4 }
 0x15b   :  { %588 = vmatmul.mubr.f32.gmra.mrb[56].mxu0 %v416_v5  ;;  %663 = vmatmul.mubr.f32.gmra.mrb[24].mxu1 %v446_v6 }
 0x15c   :  { %592 = vmatprep.mubr.f32.mxu0 %v419_v7  ;;  %667 = vmatprep.mubr.f32.mxu1 %v449_v8 }
 0x15f   :  { %593 = vmatmul.mubr.f32.gmra.mrb[58].mxu0 %v418_v9  ;;  %668 = vmatmul.mubr.f32.gmra.mrb[26].mxu1 %v448_v10 }
 0x160   :  { %597 = vmatprep.mubr.f32.mxu0 %v421_v11  ;;  %672 = vmatprep.mubr.f32.mxu1 %v451_v12 }
 0x163   :  { %598 = vmatmul.mubr.f32.gmra.mrb[60].mxu0 %v420_v13  ;;  %673 = vmatmul.mubr.f32.gmra.mrb[28].mxu1 %v450_v14 }
 0x164   :  { %677 = vmatprep.mubr.f32.mxu1 %v453_v15  ;;  %1021 = vmatprep.mubr.msk.f32.mxu0 %vm1150_vm1, %v1151_v31 }
 0x167   :  { %678 = vmatmul.mubr.f32.gmra.mrb[30].mxu1 %v452_v16 }
 0x168   :  { %682 = vmatprep.mubr.f32.mxu1 %v455_v17 }
 0x16b   :  { %683 = vmatmul.mubr.f32.gmra.mrb[32].mxu1 %v454_v18 }
 0x1fe   :  { %v529_v34 = vpop.f32.mrb[32].mxu0  ;;  %v1395_v33 = vpop.f32.mrb[0].mxu1 }
 0x1ff   :  { %v530_v35 = vadd.f32 %v1393_v32, %v529_v34  ;;  %v531_v36 = vpop.f32.mrb[33].mxu0  ;;  %v606_v37 = vpop.f32.mrb[1].mxu1 }
 0x201   :  { %v688_v40 = vmax.f32 %v530_v35, 0.0 }
 0x202   :  { %v534_v38 = vpop.f32.mrb[34].mxu0  ;;  %v1398_v39 = vpop.f32.mrb[2].mxu1 }
 0x203   :  { %v535_v41 = vadd.f32 %v1393_v32, %v534_v38  ;;  %v536_v42 = vpop.f32.mrb[35].mxu0  ;;  %v611_v43 = vpop.f32.mrb[3].mxu1  ;;  %v721_v47 = vsel %vm720_vm2, %v688_v40, 0.0 }
 0x205   :  { %v689_v44 = vmax.f32 %v535_v41, 0.0 }
 0x206   :  { %v539_v45 = vpop.f32.mrb[36].mxu0  ;;  %v1401_v46 = vpop.f32.mrb[4].mxu1 }
 0x207   :  { %v722_v48 = vsel %vm720_vm2, %v689_v44, 0.0  ;;  %v540_v49 = vadd.f32 %v1393_v32, %v539_v45  ;;  %v541_v50 = vpop.f32.mrb[37].mxu0  ;;  %v616_v51 = vpop.f32.mrb[5].mxu1 }
 0x208   :  { %v723_v52 = vadd.f32 %v722_v48, %v721_v47 }
 0x209   :  { %v690_v53 = vmax.f32 %v540_v49, 0.0 }
 0x20a   :  { %v544_v54 = vpop.f32.mrb[38].mxu0  ;;  %v1406_v55 = vpop.f32.mrb[6].mxu1 }
 0x20b   :  { %v724_v56 = vsel %vm720_vm2, %v690_v53, 0.0  ;;  %v545_v57 = vadd.f32 %v1393_v32, %v544_v54  ;;  %v546_v58 = vpop.f32.mrb[39].mxu0  ;;  %v621_v59 = vpop.f32.mrb[7].mxu1 }
 0x20c   :  { %v725_v60 = vadd.f32 %v724_v56, %v723_v52 }
 0x20d   :  { %v691_v61 = vmax.f32 %v545_v57, 0.0 }
 0x20e   :  { %v549_v62 = vpop.f32.mrb[40].mxu0  ;;  %v1410_v63 = vpop.f32.mrb[8].mxu1 }
 0x20f   :  { %v726_v0 = vsel %vm720_vm2, %v691_v61, 0.0  ;;  %v550_v1 = vadd.f32 %v1393_v32, %v549_v62  ;;  %v551_v2 = vpop.f32.mrb[41].mxu0  ;;  %v626_v3 = vpop.f32.mrb[9].mxu1 }
 0x210   :  { %v727_v4 = vadd.f32 %v726_v0, %v725_v60 }
 0x211   :  { %v692_v5 = vmax.f32 %v550_v1, 0.0 }
 0x212   :  { %v554_v6 = vpop.f32.mrb[42].mxu0  ;;  %v1414_v7 = vpop.f32.mrb[10].mxu1 }
 0x213   :  { %v728_v8 = vsel %vm720_vm2, %v692_v5, 0.0  ;;  %v555_v9 = vadd.f32 %v1393_v32, %v554_v6  ;;  %v556_v10 = vpop.f32.mrb[43].mxu0  ;;  %v631_v11 = vpop.f32.mrb[11].mxu1 }
 0x214   :  { %v729_v12 = vadd.f32 %v728_v8, %v727_v4 }
 0x215   :  { %v693_v13 = vmax.f32 %v555_v9, 0.0 }
 0x216   :  { %v559_v14 = vpop.f32.mrb[44].mxu0  ;;  %v1418_v15 = vpop.f32.mrb[12].mxu1 }
 0x217   :  { %v730_v16 = vsel %vm720_vm2, %v693_v13, 0.0  ;;  %v560_v17 = vadd.f32 %v1393_v32, %v559_v14  ;;  %v561_v18 = vpop.f32.mrb[45].mxu0  ;;  %v636_v19 = vpop.f32.mrb[13].mxu1 }
 0x218   :  { %v731_v20 = vadd.f32 %v730_v16, %v729_v12 }
 0x219   :  { %v694_v21 = vmax.f32 %v560_v17, 0.0 }
 0x21a   :  { %v564_v22 = vpop.f32.mrb[46].mxu0  ;;  %v1422_v23 = vpop.f32.mrb[14].mxu1 }
 0x21b   :  { %v732_v24 = vsel %vm720_vm2, %v694_v21, 0.0  ;;  %v565_v25 = vadd.f32 %v1393_v32, %v564_v22  ;;  %v566_v26 = vpop.f32.mrb[47].mxu0  ;;  %v641_v27 = vpop.f32.mrb[15].mxu1  ;;  %v605_v21 = vadd.f32 %v1393_v32, %v1395_v33 }
 0x21c   :  { %v733_v28 = vadd.f32 %v732_v24, %v731_v20  ;;  %v610_v26 = vadd.f32 %v1393_v32, %v1398_v39 }
 0x21d   :  { %v695_v29 = vmax.f32 %v565_v25, 0.0 }
 0x21e   :  { %v569_v30 = vpop.f32.mrb[48].mxu0  ;;  %v1426_v31 = vpop.f32.mrb[16].mxu1  ;;  %v704_v33 = vmax.f32 %v610_v26, 0.0 }
 0x21f   :  { %v734_v34 = vsel %vm720_vm2, %v695_v29, 0.0  ;;  %v570_v35 = vadd.f32 %v1393_v32, %v569_v30  ;;  %v571_v36 = vpop.f32.mrb[49].mxu0  ;;  %v646_v37 = vpop.f32.mrb[17].mxu1 }
 0x220   :  { %v735_v38 = vadd.f32 %v734_v34, %v733_v28  ;;  %v615_v36 = vadd.f32 %v1393_v32, %v1401_v46  ;;  %v752_v46 = vsel %vm720_vm2, %v704_v33, 0.0 }
 0x221   :  { %v696_v40 = vmax.f32 %v570_v35, 0.0  ;;  %v703_v35 = vmax.f32 %v605_v21, 0.0 }
 0x222   :  { %v574_v41 = vpop.f32.mrb[50].mxu0  ;;  %v1430_v42 = vpop.f32.mrb[18].mxu1 }
 0x223   :  { %v736_v43 = vsel %vm720_vm2, %v696_v40, 0.0  ;;  %v575_v44 = vadd.f32 %v1393_v32, %v574_v41  ;;  %v576_v45 = vpop.f32.mrb[51].mxu0  ;;  %v651_v47 = vpop.f32.mrb[19].mxu1  ;;  %v620_v40 = vadd.f32 %v1393_v32, %v1406_v55 }
 0x224   :  { %v737_v48 = vadd.f32 %v736_v43, %v735_v38  ;;  %v705_v45 = vmax.f32 %v615_v36, 0.0  ;;  %v625_v47 = vadd.f32 %v1393_v32, %v1410_v63 }
 0x225   :  { %v697_v49 = vmax.f32 %v575_v44, 0.0  ;;  %v750_v44 = vsel %vm720_vm2, %v703_v35, 0.0 }
 0x226   :  { %v579_v50 = vpop.f32.mrb[52].mxu0  ;;  %v1434_v51 = vpop.f32.mrb[20].mxu1 }
 0x227   :  { %v738_v52 = vsel %vm720_vm2, %v697_v49, 0.0  ;;  %v580_v53 = vadd.f32 %v1393_v32, %v579_v50  ;;  %v581_v54 = vpop.f32.mrb[53].mxu0  ;;  %v656_v56 = vpop.f32.mrb[21].mxu1  ;;  %v706_v50 = vmax.f32 %v620_v40, 0.0 }
 0x228   :  { %v739_v57 = vadd.f32 %v738_v52, %v737_v48  ;;  %v630_v52 = vadd.f32 %v1393_v32, %v1414_v7  ;;  %v754_v54 = vsel %vm720_vm2, %v705_v45, 0.0  ;;  %v707_v56 = vmax.f32 %v625_v47, 0.0 }
 0x229   :  { %v698_v58 = vmax.f32 %v580_v53, 0.0  ;;  %v645_v7 = vadd.f32 %v1393_v32, %v1426_v31 }
 0x22a   :  { %v584_v59 = vpop.f32.mrb[54].mxu0  ;;  %v1438_v60 = vpop.f32.mrb[22].mxu1  ;;  %v708_v63 = vmax.f32 %v630_v52, 0.0 }
 0x22b   :  { %v740_v61 = vsel %vm720_vm2, %v698_v58, 0.0  ;;  %v585_v62 = vadd.f32 %v1393_v32, %v584_v59  ;;  %v586_v0 = vpop.f32.mrb[55].mxu0  ;;  %v661_v1 = vpop.f32.mrb[23].mxu1  ;;  %v756_v59 = vsel %vm720_vm2, %v706_v50, 0.0  ;;  %v660_v31 = vadd.f32 %v1393_v32, %v1438_v60  ;;  %v798_v50 = vld [vmem:[%s1513_s5] sm:$0x1] }
 0x22c   :  { %v741_v2 = vadd.f32 %v740_v61, %v739_v57  ;;  %v635_v57 = vadd.f32 %v1393_v32, %v1418_v15  ;;  %v640_v61 = vadd.f32 %v1393_v32, %v1422_v23  ;;  %v758_v0 = vsel %vm720_vm2, %v707_v56, 0.0 }
 0x22d   :  { %v699_v3 = vmax.f32 %v585_v62, 0.0  ;;  %v650_v15 = vadd.f32 %v1393_v32, %v1430_v42  ;;  %v655_v23 = vadd.f32 %v1393_v32, %v1434_v51 }
 0x22e   :  { %v589_v4 = vpop.f32.mrb[56].mxu0  ;;  %v1442_v5 = vpop.f32.mrb[24].mxu1  ;;  %v709_v1 = vmax.f32 %v635_v57, 0.0 }
 0x22f   :  { %v742_v6 = vsel %vm720_vm2, %v699_v3, 0.0  ;;  %v590_v8 = vadd.f32 %v1393_v32, %v589_v4  ;;  %v591_v9 = vpop.f32.mrb[57].mxu0  ;;  %v666_v10 = vpop.f32.mrb[25].mxu1  ;;  %v760_v3 = vsel %vm720_vm2, %v708_v63, 0.0  ;;  %v710_v4 = vmax.f32 %v640_v61, 0.0 }
 0x230   :  { %v743_v11 = vadd.f32 %v742_v6, %v741_v2  ;;  %v711_v9 = vmax.f32 %v645_v7, 0.0  ;;  %v665_v42 = vadd.f32 %v1393_v32, %v1442_v5 }
 0x231   :  { %v700_v12 = vmax.f32 %v590_v8, 0.0  ;;  %v762_v8 = vsel %vm720_vm2, %v709_v1, 0.0 }
 0x232   :  { %v594_v13 = vpop.f32.mrb[58].mxu0  ;;  %v1446_v14 = vpop.f32.mrb[26].mxu1 }
 0x233   :  { %v744_v16 = vsel %vm720_vm2, %v700_v12, 0.0  ;;  %v595_v17 = vadd.f32 %v1393_v32, %v594_v13  ;;  %v596_v18 = vpop.f32.mrb[59].mxu0  ;;  %v671_v19 = vpop.f32.mrb[27].mxu1  ;;  %v712_v12 = vmax.f32 %v650_v15, 0.0  ;;  %v670_v51 = vadd.f32 %v1393_v32, %v1446_v14 }
 0x234   :  { %v745_v20 = vadd.f32 %v744_v16, %v743_v11  ;;  %v764_v11 = vsel %vm720_vm2, %v710_v4, 0.0  ;;  %v766_v16 = vsel %vm720_vm2, %v711_v9, 0.0 }
 0x235   :  { %v701_v22 = vmax.f32 %v595_v17, 0.0  ;;  %v713_v17 = vmax.f32 %v655_v23, 0.0  ;;  %v768_v19 = vsel %vm720_vm2, %v712_v12, 0.0 }
 0x236   :  { %v599_v24 = vpop.f32.mrb[60].mxu0  ;;  %v674_v25 = vpop.f32.mrb[28].mxu1 }
 0x237   :  { %v746_v27 = vsel %vm720_vm2, %v701_v22, 0.0  ;;  %v600_v28 = vadd.f32 %v1393_v32, %v599_v24  ;;  %v601_v29 = vpop.f32.mrb[61].mxu0  ;;  %v676_v30 = vpop.f32.mrb[29].mxu1  ;;  %v770_v22 = vsel %vm720_vm2, %v713_v17, 0.0  ;;  %v715_v24 = vmax.f32 %v665_v42, 0.0 }
 0x238   :  { %v747_v34 = vadd.f32 %v746_v27, %v745_v20  ;;  %v714_v20 = vmax.f32 %v660_v31, 0.0  ;;  %v675_v60 = vadd.f32 %v1393_v32, %v674_v25 }
 0x239   :  { %v702_v37 = vmax.f32 %v600_v28, 0.0  ;;  %v716_v28 = vmax.f32 %v670_v51, 0.0 }
 0x23a   :  { %v679_v38 = vpop.f32.mrb[30].mxu1  ;;  %v772_v27 = vsel %vm720_vm2, %v714_v20, 0.0  ;;  %v717_v35 = vmax.f32 %v675_v60, 0.0 }
 0x23b   :  { %v748_v41 = vsel %vm720_vm2, %v702_v37, 0.0  ;;  %v681_v39 = vpop.f32.mrb[31].mxu1  ;;  %v680_v29 = vadd.f32 %v1393_v32, %v679_v38  ;;  %v776_v14 = vsel %vm720_vm2, %v716_v28, 0.0 }
 0x23c   :  { %v749_v43 = vadd.f32 %v748_v41, %v747_v34  ;;  %v774_v34 = vsel %vm720_vm2, %v715_v24, 0.0  ;;  %v778_v25 = vsel %vm720_vm2, %v717_v35, 0.0 }
 0x23d   :  { %v718_v37 = vmax.f32 %v680_v29, 0.0 }
 0x23e   :  { %v751_v48 = vadd.f32 %v750_v44, %v749_v43  ;;  %v684_v49 = vpop.f32.mrb[32].mxu1 }
 0x23f   :  { %v686_v53 = vpop.f32.mrb[33].mxu1  ;;  %v685_v5 = vadd.f32 %v1393_v32, %v684_v49  ;;  %v780_v39 = vsel %vm720_vm2, %v718_v37, 0.0 }
 0x240   :  { %v753_v55 = vadd.f32 %v752_v46, %v751_v48 }
 0x241   :  { %v719_v33 = vmax.f32 %v685_v5, 0.0 }
 0x242   :  { %v755_v58 = vadd.f32 %v754_v54, %v753_v55 }
 0x243   :  { %v782_v43 = vsel %vm720_vm2, %v719_v33, 0.0 }
 0x244   :  { %v757_v62 = vadd.f32 %v756_v59, %v755_v58 }
 0x246   :  { %v759_v2 = vadd.f32 %v758_v0, %v757_v62 }
 0x248   :  { %v761_v6 = vadd.f32 %v760_v3, %v759_v2 }
 0x24a   :  { %v763_v10 = vadd.f32 %v762_v8, %v761_v6 }
 0x24c   :  { %v765_v13 = vadd.f32 %v764_v11, %v763_v10 }
 0x24e   :  { %v767_v18 = vadd.f32 %v766_v16, %v765_v13 }
 0x250   :  { %v769_v21 = vadd.f32 %v768_v19, %v767_v18 }
 0x252   :  { %v771_v26 = vadd.f32 %v770_v22, %v769_v21 }
 0x254   :  { %v773_v30 = vadd.f32 %v772_v27, %v771_v26 }
 0x256   :  { %v775_v36 = vadd.f32 %v774_v34, %v773_v30 }
 0x258   :  { %v777_v40 = vadd.f32 %v776_v14, %v775_v36 }
 0x25a   :  { %v779_v41 = vadd.f32 %v778_v25, %v777_v40 }
 0x25c   :  { %v781_v38 = vadd.f32 %v780_v39, %v779_v41 }
 0x25e   :  { %v783_v44 = vadd.f32 %v782_v43, %v781_v38 }
 0x260   :  { %v784_v32 = vrot.slane %v783_v44, 4 }
 0x262   :  { %v785_v45 = vadd.f32 %v784_v32, %v783_v44 }
 0x264   :  { %v786_v47 = vrot.slane %v785_v45, 2 }
 0x266   :  { %v787_v48 = vadd.f32 %v786_v47, %v785_v45 }
 0x268   :  { %v788_v49 = vrot.slane %v787_v48, 1 }
 0x26a   :  { %v789_v46 = vadd.f32 %v788_v49, %v787_v48 }
 0x26c   :  { %1022 = vmatmul.mubr.msk.f32.vlgmr.msra.gmra.mrb[62].mxu0 %vm720_vm2, %v789_v46 }
 0x33f   :  { %v868_v52 = vpop.f32.mrb[62].mxu0 }
 0x340   :  { %v869_v53 = vadd.f32 %v868_v52, %v798_v50  ;;  %v1023_v55 = vpop.f32.mrb[63].mxu0 }
 0x342   :  { %873 = vst.msk [vmem:[%s1514_s6] sm:$0x1] %vm872_vm3, %v869_v53 }
 0x343   :  { %878 = vsyncpa [#allocation3], 1 }

</bundles_post_ra>
